<compile_context>
chip_gen: v7x
topology: tpu7x:2x2x1
jax: 0.10.0
libtpu: 0.0.40
codegen_flags: <defaults>
</compile_context>

<pallas_src>
import jax
import jax.numpy as jnp
from jax.experimental import pallas as pl
from jax.experimental.pallas import tpu as pltpu

_NEG_MASK = -1e30   # finite "minus infinity"; two stacked masks stay finite


def _make_attn_kernel(scale, has_prev, has_amask, has_kpm, need_weights,
                      emit_scores):
    """Build a kernel specialized for exactly the inputs/outputs in use."""

    def kernel(*refs):
        it = iter(refs)
        q_ref = next(it)
        k_ref = next(it)
        v_ref = next(it)
        prev_ref = next(it) if has_prev else None
        amask_ref = next(it) if has_amask else None
        kpm_ref = next(it) if has_kpm else None
        out_ref = next(it)
        attn_ref = next(it) if need_weights else None
        scores_ref = next(it) if emit_scores else None

        # Fold the scale into q: work over (bh, bq, d_k) instead of the much
        # larger (bh, bq, seq_len) scores tensor.
        q = q_ref[...]                              # (block_h, block_q, d_k)
        if q.dtype == jnp.float32:
            q = q * jnp.float32(scale)
        else:
            q = (q.astype(jnp.float32) * jnp.float32(scale)).astype(q.dtype)

        # scores = (q*scale) @ k [+ prev] [+ attn_mask] [+ key_padding_mask]
        s = jnp.einsum("hqd,hds->hqs", q, k_ref[...],
                       preferred_element_type=jnp.float32)
        if has_prev:
            prev = prev_ref[...]
            if prev.dtype != jnp.float32:
                prev = prev.astype(jnp.float32)
            s = s + prev
        if has_amask:
            s = s + amask_ref[...][None]            # (1, block_q, seq_len)
        if has_kpm:
            s = s + kpm_ref[...][None]              # (1, 1, seq_len)
        if emit_scores:
            scores_ref[...] = s.astype(scores_ref.dtype)

        # Numerically stable softmax along the key axis. Exact normalization:
        # attn is a user-visible output and out = attn @ v needs it tight.
        m = jnp.max(s, axis=-1, keepdims=True)
        p = jnp.exp(s - m)
        denom = jnp.sum(p, axis=-1, keepdims=True)
        attn = p / denom
        if need_weights:
            attn_ref[...] = attn.astype(attn_ref.dtype)

        pv = attn if attn.dtype == v_ref.dtype else attn.astype(v_ref.dtype)
        out = jnp.einsum("hqs,hsd->hqd", pv, v_ref[...],
                         preferred_element_type=jnp.float32)
        out_ref[...] = out.astype(out_ref.dtype)
        # TODO(synk): attn_dropout > 0.0 (training) not implemented; the module
        #             default attn_dropout=0.0 is an identity.
        # TODO(synk): for d_v < 128 a lane-dense (block_q, block_h*d_v) output
        #             layout would avoid masked partial stores on the small
        #             `out` stream; skipped to preserve the contract layout.

    return kernel


def _vmem_budget_bytes():
    try:
        info = pltpu.get_tpu_info()
        cap = getattr(info, "vmem_capacity_bytes", None)
        if cap:
            return int(cap * 0.70)
    except Exception:
        pass
    return 48 << 20     # conservative default that fits every TPU generation


def scaled_dot_product_attention(q, k, v, scale, prev=None,
                                 key_padding_mask=None, attn_mask=None,
                                 res_attention=False, *,
                                 matmul_dtype=None, out_dtype=None,
                                 weights_dtype=None, need_weights=True,
                                 block_q=None, block_h=None,
                                 vmem_limit_bytes=None):
    """Pallas implementation of `_ScaledDotProductAttention.forward`."""
    f32 = jnp.float32
    bs, n_heads, q_len, d_k = q.shape
    seq_len = k.shape[-1]
    d_v = v.shape[-1]

    # TODO(synk): learnable scale (lsa=True) would need scalar prefetch; here
    #             `scale` is folded in as a compile-time constant.
    scale = float(scale)
    need_weights = bool(need_weights) or bool(res_attention)
    out_dtype = q.dtype if out_dtype is None else jnp.dtype(out_dtype)
    weights_dtype = (q.dtype if weights_dtype is None
                     else jnp.dtype(weights_dtype))

    # Stream the matmul operands in the dtype the MXU should consume: keeps
    # bf16 inputs at 2 B/elem through the DMA (no per-step VPU casts either).
    if matmul_dtype is not None and jnp.dtype(matmul_dtype) != q.dtype:
        mm = jnp.dtype(matmul_dtype)
        q, k, v = q.astype(mm), k.astype(mm), v.astype(mm)

    has_prev = prev is not None
    has_amask = attn_mask is not None
    has_kpm = key_padding_mask is not None

    # --- VMEM-aware tile selection ------------------------------------------
    qb, kb, vb = q.dtype.itemsize, k.dtype.itemsize, v.dtype.itemsize
    pb = prev.dtype.itemsize if has_prev else 0
    wb = jnp.dtype(weights_dtype).itemsize
    ob = jnp.dtype(out_dtype).itemsize

    def estimate(bh, bq):
        total = 2 * bh * bq * d_k * qb               # Q (double-buffered)
        total += 2 * bh * d_k * seq_len * kb         # K
        total += 2 * bh * seq_len * d_v * vb         # V
        if has_prev:
            total += 2 * bh * bq * seq_len * pb
        if has_amask:
            total += 2 * bq * seq_len * 4
        if has_kpm:
            total += 2 * seq_len * 4
        total += 2 * bh * bq * d_v * ob              # out
        if need_weights:
            total += 2 * bh * bq * seq_len * wb      # attn
        if res_attention:
            total += 2 * bh * bq * seq_len * wb      # scores
        total += 2 * bh * bq * seq_len * 4           # f32 softmax live values
        return total

    if block_q is not None:
        assert q_len % block_q == 0, "q_len must be divisible by block_q"
        q_cands = [block_q]
    else:
        q_cands = []
        if q_len <= 512:
            q_cands.append(q_len)
        for cand in (512, 256, 128):     # prefer >=256 rows for 256-deep MXUs
            if cand < q_len and q_len % cand == 0:
                q_cands.append(cand)
        if not q_cands:
            q_cands = [q_len]
    if block_h is not None:
        assert n_heads % block_h == 0, "n_heads must be divisible by block_h"
        h_cands = [block_h]
    else:
        h_cands = [h for h in range(n_heads, 0, -1) if n_heads % h == 0]

    budget = _vmem_budget_bytes()
    sel_h, sel_q = h_cands[-1], q_cands[-1]
    found = False
    for bh in h_cands:               # keep K/V residency (big block_h) first,
        for bq in q_cands:           # then the largest q tile that fits
            if estimate(bh, bq) <= budget:
                sel_h, sel_q, found = bh, bq, True
                break
        if found:
            break
    block_h, block_q = sel_h, sel_q

    # --- inputs / BlockSpecs -------------------------------------------------
    inputs = [q, k, v]
    in_specs = [
        pl.BlockSpec((None, block_h, block_q, d_k),
                     lambda b, h, i: (b, h, i, 0)),
        pl.BlockSpec((None, block_h, d_k, seq_len),
                     lambda b, h, i: (b, h, 0, 0)),
        pl.BlockSpec((None, block_h, seq_len, d_v),
                     lambda b, h, i: (b, h, 0, 0)),
    ]
    if has_prev:
        inputs.append(prev)                  # native dtype; cast inside kernel
        in_specs.append(pl.BlockSpec((None, block_h, block_q, seq_len),
                                     lambda b, h, i: (b, h, i, 0)))
    if has_amask:
        if attn_mask.dtype == jnp.bool_:
            amask = jnp.where(attn_mask, _NEG_MASK, 0.0).astype(f32)
        else:
            amask = attn_mask.astype(f32)
        amask = amask.reshape(1, q_len, seq_len)
        inputs.append(amask)
        in_specs.append(pl.BlockSpec((None, block_q, seq_len),
                                     lambda b, h, i: (0, i, 0)))
    if has_kpm:
        kpm_add = jnp.where(key_padding_mask.astype(jnp.bool_),
                            _NEG_MASK, 0.0).astype(f32).reshape(bs, 1, seq_len)
        inputs.append(kpm_add)
        in_specs.append(pl.BlockSpec((None, 1, seq_len),
                                     lambda b, h, i: (b, 0, 0)))

    out_shapes = [jax.ShapeDtypeStruct((bs, n_heads, q_len, d_v), out_dtype)]
    out_specs = [pl.BlockSpec((None, block_h, block_q, d_v),
                              lambda b, h, i: (b, h, i, 0))]
    if need_weights:
        out_shapes.append(
            jax.ShapeDtypeStruct((bs, n_heads, q_len, seq_len), weights_dtype))
        out_specs.append(pl.BlockSpec((None, block_h, block_q, seq_len),
                                      lambda b, h, i: (b, h, i, 0)))
    if res_attention:      # pay the scores HBM write-back only when requested
        out_shapes.append(
            jax.ShapeDtypeStruct((bs, n_heads, q_len, seq_len), weights_dtype))
        out_specs.append(pl.BlockSpec((None, block_h, block_q, seq_len),
                                      lambda b, h, i: (b, h, i, 0)))

    kernel = _make_attn_kernel(scale, has_prev, has_amask, has_kpm,
                               need_weights, res_attention)

    compiler_kwargs = dict(
        dimension_semantics=("parallel", "parallel", "arbitrary"))
    if vmem_limit_bytes is None:
        est = estimate(block_h, block_q)
        if est > (12 << 20):   # won't fit under the smallest default scope
            vmem_limit_bytes = int(min(budget, max(est * 13 // 10, 32 << 20)))
    if vmem_limit_bytes is not None:
        compiler_kwargs["vmem_limit_bytes"] = int(vmem_limit_bytes)

    results = pl.pallas_call(
        kernel,
        out_shape=tuple(out_shapes),
        grid_spec=pltpu.PrefetchScalarGridSpec(
            num_scalar_prefetch=0,
            grid=(bs, n_heads // block_h, q_len // block_q),
            in_specs=in_specs,
            out_specs=tuple(out_specs),
        ),
        compiler_params=pltpu.CompilerParams(**compiler_kwargs),
    )(*inputs)

    if res_attention:
        out, attn, scores = results
        return out, attn, scores
    if need_weights:
        out, attn = results
        return out, attn
    return results[0]


if __name__ == "__main__":
    # Small shapes consistent with the module's forward contract.
    bs, n_heads, q_len, seq_len = 2, 4, 8, 8
    d_model = 32
    d_k = d_model // n_heads          # head_dim = 8
    d_v = d_k

    key = jax.random.PRNGKey(0)
    kq, kk, kv, kp = jax.random.split(key, 4)
    q = jax.random.normal(kq, (bs, n_heads, q_len, d_k), dtype=jnp.float32)
    k = jax.random.normal(kk, (bs, n_heads, d_k, seq_len), dtype=jnp.float32)
    v = jax.random.normal(kv, (bs, n_heads, seq_len, d_v), dtype=jnp.float32)
    prev = 0.1 * jax.random.normal(kp, (bs, n_heads, q_len, seq_len),
                                   dtype=jnp.float32)

    scale = float(d_k) ** (-0.5)      # matches __init__: head_dim ** -0.5
    HIGH = jax.lax.Precision.HIGHEST

    # --- Path 1: residual attention with `prev` (3 outputs) -----------------
    out, attn, scores = scaled_dot_product_attention(
        q, k, v, scale, prev=prev, res_attention=True)
    jax.block_until_ready((out, attn, scores))

    ref_scores = jnp.einsum("bhqd,bhds->bhqs", q, k, precision=HIGH) * scale + prev
    ref_attn = jax.nn.softmax(ref_scores, axis=-1)
    ref_out = jnp.einsum("bhqs,bhsd->bhqd", ref_attn, v, precision=HIGH)
    assert jnp.allclose(scores, ref_scores, atol=1e-3, rtol=1e-3)
    assert jnp.allclose(attn, ref_attn, atol=2e-3, rtol=2e-3)
    assert jnp.allclose(out, ref_out, atol=2e-3, rtol=2e-3)

    # --- Path 2: common inference path (no prev / masks) ---------------------
    out2, attn2 = scaled_dot_product_attention(q, k, v, scale)
    jax.block_until_ready((out2, attn2))

    ref_scores2 = jnp.einsum("bhqd,bhds->bhqs", q, k, precision=HIGH) * scale
    ref_attn2 = jax.nn.softmax(ref_scores2, axis=-1)
    ref_out2 = jnp.einsum("bhqs,bhsd->bhqd", ref_attn2, v, precision=HIGH)
    assert jnp.allclose(attn2, ref_attn2, atol=2e-3, rtol=2e-3)
    assert jnp.allclose(out2, ref_out2, atol=2e-3, rtol=2e-3)

    # --- Path 3: causal attn_mask + key_padding_mask --------------------------
    kpm = jnp.zeros((bs, seq_len), jnp.bool_).at[:, -2:].set(True)
    causal = jnp.triu(jnp.ones((q_len, seq_len), jnp.bool_), k=1)[None]
    out3, attn3 = scaled_dot_product_attention(
        q, k, v, scale, key_padding_mask=kpm, attn_mask=causal)
    jax.block_until_ready((out3, attn3))

    masked = jnp.where(causal, -jnp.inf, ref_scores2)
    masked = jnp.where(kpm[:, None, None, :], -jnp.inf, masked)
    ref_attn3 = jax.nn.softmax(masked, axis=-1)
    ref_out3 = jnp.einsum("bhqs,bhsd->bhqd", ref_attn3, v, precision=HIGH)
    assert jnp.allclose(attn3, ref_attn3, atol=2e-3, rtol=2e-3)
    assert jnp.allclose(out3, ref_out3, atol=2e-3, rtol=2e-3)

    # --- Path 4: output-only (skip the attn HBM write-back) ------------------
    out4 = scaled_dot_product_attention(q, k, v, scale, need_weights=False)
    jax.block_until_ready(out4)
    assert jnp.allclose(out4, ref_out2, atol=2e-3, rtol=2e-3)

    # --- Path 5: bf16 DMA + bf16 MXU (f32 softmax / f32 outputs) -------------
    out5, attn5 = scaled_dot_product_attention(
        q, k, v, scale, matmul_dtype=jnp.bfloat16)
    jax.block_until_ready((out5, attn5))
    assert jnp.allclose(attn5, ref_attn2, atol=1e-1, rtol=1e-1)
    assert jnp.allclose(out5, ref_out2, atol=1e-1, rtol=1e-1)

    print("KERNEL_OK")
</pallas_src>

<mosaic_0001>
module attributes {stable_mosaic.version = 11 : i64} {
  func.func @kernel(%arg0: i32, %arg1: i32, %arg2: i32, %arg3: memref<1x4x8x8xf32, #tpu.memory_space<vmem>>, %arg4: memref<1x4x8x8xf32, #tpu.memory_space<vmem>>, %arg5: memref<1x4x8x8xf32, #tpu.memory_space<vmem>>, %arg6: memref<1x4x8x8xf32, #tpu.memory_space<vmem>>, %arg7: memref<1x4x8x8xf32, #tpu.memory_space<vmem>>, %arg8: memref<1x4x8x8xf32, #tpu.memory_space<vmem>>, %arg9: memref<1x4x8x8xf32, #tpu.memory_space<vmem>>) attributes {dimension_semantics = [#tpu.dimension_semantics<parallel>, #tpu.dimension_semantics<parallel>, #tpu.dimension_semantics<arbitrary>], iteration_bounds = array<i64: 2, 1, 1>, scalar_prefetch = 0 : i64, scratch_operands = 0 : i64, tpu.core_type = #tpu.core_type<tc>, window_params = [{transform_indices = @transform_0, window_bounds = array<i64: 1, 4, 8, 8>}, {transform_indices = @transform_1, window_bounds = array<i64: 1, 4, 8, 8>}, {transform_indices = @transform_2, window_bounds = array<i64: 1, 4, 8, 8>}, {transform_indices = @transform_3, window_bounds = array<i64: 1, 4, 8, 8>}, {transform_indices = @transform_4, window_bounds = array<i64: 1, 4, 8, 8>}, {transform_indices = @transform_5, window_bounds = array<i64: 1, 4, 8, 8>}, {transform_indices = @transform_6, window_bounds = array<i64: 1, 4, 8, 8>}]} {
    %c0 = arith.constant 0 : index
    %c0_0 = arith.constant 0 : index
    %c0_1 = arith.constant 0 : index
    %c0_2 = arith.constant 0 : index
    %0 = vector.load %arg3[%c0, %c0_0, %c0_1, %c0_2] : memref<1x4x8x8xf32, #tpu.memory_space<vmem>>, vector<1x4x8x8xf32>
    %1 = vector.shape_cast %0 : vector<1x4x8x8xf32> to vector<4x8x8xf32>
    %cst = arith.constant 0.353553385 : f32
    %2 = vector.broadcast %cst : f32 to vector<4x8x8xf32>
    %3 = arith.mulf %1, %2 : vector<4x8x8xf32>
    %c0_3 = arith.constant 0 : index
    %c0_4 = arith.constant 0 : index
    %c0_5 = arith.constant 0 : index
    %c0_6 = arith.constant 0 : index
    %4 = vector.load %arg4[%c0_3, %c0_4, %c0_5, %c0_6] : memref<1x4x8x8xf32, #tpu.memory_space<vmem>>, vector<1x4x8x8xf32>
    %5 = vector.shape_cast %4 : vector<1x4x8x8xf32> to vector<4x8x8xf32>
    "tpu.trace_start"() <{level = 10 : i32, message = "hqd,hds->hqs"}> : () -> ()
    %cst_7 = arith.constant dense<0.000000e+00> : vector<4x8x8xf32>
    %6 = tpu.matmul %3, %5, %cst_7 {dimension_numbers = #tpu.dot_dimension_numbers<[2], [1], [1], [2], [0, 0, 0, 1, 1, 2], [0], [0]>} : vector<4x8x8xf32>, vector<4x8x8xf32>, vector<4x8x8xf32> -> vector<4x8x8xf32>
    "tpu.trace_stop"() : () -> ()
    %c0_8 = arith.constant 0 : index
    %c0_9 = arith.constant 0 : index
    %c0_10 = arith.constant 0 : index
    %c0_11 = arith.constant 0 : index
    %7 = vector.load %arg6[%c0_8, %c0_9, %c0_10, %c0_11] : memref<1x4x8x8xf32, #tpu.memory_space<vmem>>, vector<1x4x8x8xf32>
    %8 = vector.shape_cast %7 : vector<1x4x8x8xf32> to vector<4x8x8xf32>
    %9 = arith.addf %6, %8 : vector<4x8x8xf32>
    %c0_12 = arith.constant 0 : index
    %c0_13 = arith.constant 0 : index
    %c0_14 = arith.constant 0 : index
    %c0_15 = arith.constant 0 : index
    %10 = vector.load %arg9[%c0_12, %c0_13, %c0_14, %c0_15] : memref<1x4x8x8xf32, #tpu.memory_space<vmem>>, vector<1x4x8x8xf32>
    %11 = vector.shape_cast %10 : vector<1x4x8x8xf32> to vector<4x8x8xf32>
    %12 = vector.shape_cast %9 : vector<4x8x8xf32> to vector<1x4x8x8xf32>
    tpu.vector_store %arg9[%c0_12, %c0_13, %c0_14, %c0_15], %12 {strides = array<i32>} : memref<1x4x8x8xf32, #tpu.memory_space<vmem>>, vector<1x4x8x8xf32>,
    %cst_16 = arith.constant dense<0xFF800000> : vector<4x8xf32>
    %13 = vector.multi_reduction <maximumf>, %9, %cst_16 [2] : vector<4x8x8xf32> to vector<4x8xf32>
    %14 = vector.shape_cast %13 : vector<4x8xf32> to vector<4x8x1xf32>
    %15 = vector.broadcast %14 : vector<4x8x1xf32> to vector<4x8x8xf32>
    %16 = arith.subf %9, %15 : vector<4x8x8xf32>
    %17 = math.exp %16 : vector<4x8x8xf32>
    %cst_17 = arith.constant dense<0.000000e+00> : vector<4x8xf32>
    %18 = vector.multi_reduction <add>, %17, %cst_17 [2] : vector<4x8x8xf32> to vector<4x8xf32>
    %19 = vector.shape_cast %18 : vector<4x8xf32> to vector<4x8x1xf32>
    %20 = vector.broadcast %19 : vector<4x8x1xf32> to vector<4x8x8xf32>
    %21 = arith.divf %17, %20 : vector<4x8x8xf32>
    %c0_18 = arith.constant 0 : index
    %c0_19 = arith.constant 0 : index
    %c0_20 = arith.constant 0 : index
    %c0_21 = arith.constant 0 : index
    %22 = vector.load %arg8[%c0_18, %c0_19, %c0_20, %c0_21] : memref<1x4x8x8xf32, #tpu.memory_space<vmem>>, vector<1x4x8x8xf32>
    %23 = vector.shape_cast %22 : vector<1x4x8x8xf32> to vector<4x8x8xf32>
    %24 = vector.shape_cast %21 : vector<4x8x8xf32> to vector<1x4x8x8xf32>
    tpu.vector_store %arg8[%c0_18, %c0_19, %c0_20, %c0_21], %24 {strides = array<i32>} : memref<1x4x8x8xf32, #tpu.memory_space<vmem>>, vector<1x4x8x8xf32>,
    %c0_22 = arith.constant 0 : index
    %c0_23 = arith.constant 0 : index
    %c0_24 = arith.constant 0 : index
    %c0_25 = arith.constant 0 : index
    %25 = vector.load %arg5[%c0_22, %c0_23, %c0_24, %c0_25] : memref<1x4x8x8xf32, #tpu.memory_space<vmem>>, vector<1x4x8x8xf32>
    %26 = vector.shape_cast %25 : vector<1x4x8x8xf32> to vector<4x8x8xf32>
    "tpu.trace_start"() <{level = 10 : i32, message = "hqs,hsd->hqd"}> : () -> ()
    %cst_26 = arith.constant dense<0.000000e+00> : vector<4x8x8xf32>
    %27 = tpu.matmul %21, %26, %cst_26 {dimension_numbers = #tpu.dot_dimension_numbers<[2], [1], [1], [2], [0, 0, 0, 1, 1, 2], [0], [0]>} : vector<4x8x8xf32>, vector<4x8x8xf32>, vector<4x8x8xf32> -> vector<4x8x8xf32>
    "tpu.trace_stop"() : () -> ()
    %c0_27 = arith.constant 0 : index
    %c0_28 = arith.constant 0 : index
    %c0_29 = arith.constant 0 : index
    %c0_30 = arith.constant 0 : index
    %28 = vector.load %arg7[%c0_27, %c0_28, %c0_29, %c0_30] : memref<1x4x8x8xf32, #tpu.memory_space<vmem>>, vector<1x4x8x8xf32>
    %29 = vector.shape_cast %28 : vector<1x4x8x8xf32> to vector<4x8x8xf32>
    %30 = vector.shape_cast %27 : vector<4x8x8xf32> to vector<1x4x8x8xf32>
    tpu.vector_store %arg7[%c0_27, %c0_28, %c0_29, %c0_30], %30 {strides = array<i32>} : memref<1x4x8x8xf32, #tpu.memory_space<vmem>>, vector<1x4x8x8xf32>,
    return
  }
  func.func @transform_0(%arg0: i32, %arg1: i32, %arg2: i32) -> (i32, i32, i32, i32) {
    %c0_i32 = arith.constant 0 : i32
    %c0_i32_0 = arith.constant 0 : i32
    return %arg0, %arg1, %arg2, %c0_i32 : i32, i32, i32, i32
  }
  func.func @transform_1(%arg0: i32, %arg1: i32, %arg2: i32) -> (i32, i32, i32, i32) {
    %c0_i32 = arith.constant 0 : i32
    %c0_i32_0 = arith.constant 0 : i32
    %c0_i32_1 = arith.constant 0 : i32
    return %arg0, %arg1, %c0_i32, %c0_i32_0 : i32, i32, i32, i32
  }
  func.func @transform_2(%arg0: i32, %arg1: i32, %arg2: i32) -> (i32, i32, i32, i32) {
    %c0_i32 = arith.constant 0 : i32
    %c0_i32_0 = arith.constant 0 : i32
    %c0_i32_1 = arith.constant 0 : i32
    return %arg0, %arg1, %c0_i32, %c0_i32_0 : i32, i32, i32, i32
  }
  func.func @transform_3(%arg0: i32, %arg1: i32, %arg2: i32) -> (i32, i32, i32, i32) {
    %c0_i32 = arith.constant 0 : i32
    %c0_i32_0 = arith.constant 0 : i32
    return %arg0, %arg1, %arg2, %c0_i32 : i32, i32, i32, i32
  }
  func.func @transform_4(%arg0: i32, %arg1: i32, %arg2: i32) -> (i32, i32, i32, i32) {
    %c0_i32 = arith.constant 0 : i32
    %c0_i32_0 = arith.constant 0 : i32
    return %arg0, %arg1, %arg2, %c0_i32 : i32, i32, i32, i32
  }
  func.func @transform_5(%arg0: i32, %arg1: i32, %arg2: i32) -> (i32, i32, i32, i32) {
    %c0_i32 = arith.constant 0 : i32
    %c0_i32_0 = arith.constant 0 : i32
    return %arg0, %arg1, %arg2, %c0_i32 : i32, i32, i32, i32
  }
  func.func @transform_6(%arg0: i32, %arg1: i32, %arg2: i32) -> (i32, i32, i32, i32) {
    %c0_i32 = arith.constant 0 : i32
    %c0_i32_0 = arith.constant 0 : i32
    return %arg0, %arg1, %arg2, %c0_i32 : i32, i32, i32, i32
  }
}

</mosaic_0001>

<bundles_post_ra>
// kernel: tpu_custom_call.1
= control target key start
LH: loop header
LB: loop body
LE: loop exit
PB: predicated region body
PF: predicated region fallthrough
CT: control target
= control target key end

     0   :  { %s2449_s0 = inlined_call_operand.hbm [shape: f32[2,4,8,8], index: 0, kind: input, shape index: {}]   ;;  %s2450_s1 = inlined_call_operand.hbm [shape: f32[2,4,8,8], index: 1, kind: input, shape index: {}]   ;;  %s2451_s2 = inlined_call_operand.hbm [shape: f32[2,4,8,8], index: 2, kind: input, shape index: {}]   ;;  %s2452_s3 = inlined_call_operand.hbm [shape: f32[2,4,8,8], index: 3, kind: input, shape index: {}]   ;;  %s2453_s4 = inlined_call_operand.hbm [shape: f32[2,4,8,8], index: 4, kind: output, shape index: {0}]   ;;  %s2454_s5 = inlined_call_operand.hbm [shape: f32[2,4,8,8], index: 5, kind: output, shape index: {1}]   ;;  %s2455_s6 = inlined_call_operand.hbm [shape: f32[2,4,8,8], index: 6, kind: output, shape index: {2}]  }
   0x1   :  { %2470 = sst [smem:[#allocation26_spill]] %s2449_s0 }
   0x2   :  { %2471 = sst [smem:[#allocation27_spill]] %s2450_s1 }
   0x3   :  { %12 = vsyncpa [#allocation3], 0 }
   0x4   :  { %14 = vsyncpa [#allocation3 + $0x1], 0 }
   0x5   :  { %15 = vsyncpa [#allocation6], 0 }
   0x6   :  { %17 = vsyncpa [#allocation6 + $0x1], 0 }
   0x7   :  { %18 = vsyncpa [#allocation9], 0 }
   0x8   :  { %20 = vsyncpa [#allocation9 + $0x1], 0 }
   0x9   :  { %21 = vsyncpa [#allocation4], 0 }
   0xa   :  { %23 = vsyncpa [#allocation4 + $0x1], 0 }
   0xb   :  { %24 = vsyncpa [#allocation12], 0 }
   0xc   :  { %26 = vsyncpa [#allocation12 + $0x1], 0  ;;  %s1963_s21 = smov 0   ;;  %s1965_s22 = smov 0  }
   0xd   :  { %s1967_s23 = smov 0   ;;  %s1969_s24 = smov 0  }
   0xe   :  { %s1971_s25 = smov 0   ;;  %s1973_s26 = smov 0  }
   0xf LB: > { %2472 = sst [smem:[#allocation19_spill]] %s1893_s21  ;;  %s1994_s27 = sadd.s32 4294967295, %s1913_s26   ;;  %s1913_s26 = sphi %s1973_s26, %s32_s26   ;;  %s1909_s25 = sphi %s1971_s25, %s2504_s25   ;;  %s1905_s24 = sphi %s1969_s24, %s2503_s24   ;;  %s1901_s23 = sphi %s1967_s23, %s2502_s23   ;;  %s1897_s22 = sphi %s1965_s22, %s2506_s22   ;;  %s1893_s21 = sphi %s1963_s21, %s2505_s21  }
  0x10   : > { %2473 = sst [smem:[#allocation20_spill]] %s1901_s23  ;;  %s2456_s28 = sadd.s32 4294967294, %s1913_s26  }
  0x11   : > { %2474 = sst [smem:[#allocation21_spill]] %s1909_s25  ;;  %s51_s29 = sadd.s32 1, %s1909_s25 }
  0x12   : > { %2475 = sst [smem:[#allocation22_spill]] %s1913_s26  ;;  %s62_s30 = sadd.s32 1, %s1901_s23 }
  0x13   : > { %p53_p0 = scmp.ge.s32.totalorder %s51_s29, 2  ;;  %p69_p1 = scmp.ne.s32.totalorder %s1901_s23, %s1897_s22 }
  0x14   : > { %p70_p2 = scmp.eq.s32.totalorder %s1913_s26, 0  ;;  %p75_p3 = scmp.ne.s32.totalorder %s1897_s22, %s1893_s21 }
  0x15   : > { %s2508_s29 = smov (%p53_p0, %s51_s29), 0  ;;  %p76_p5 = scmp.eq.s32.totalorder %s1994_s27, 0 }
  0x16   : > { %2476 = sst [smem:[#allocation23_spill]] %s2508_s29  ;;  %p2006_p4 = por %p70_p2, %p69_p1 }
  0x17   : > { %s55_s8 = ssub.s32 %s1909_s25, %s2508_s29  ;;  %p189_p6 = scmp.eq.s32.totalorder %s1994_s27, 1 }
  0x18   : > { %p60_p7 = scmp.eq.s32.totalorder %s55_s8, 0  ;;  %p2014_p8 = por %p76_p5, %p75_p3 }
  0x19   : > { %p2018_p9 = por %p189_p6, %p69_p1  ;;  %p195_p10 = scmp.eq.s32.totalorder %s2456_s28, 1 }
  0x1a   : > { %s2478_s9 = scalar_select %p2014_p8, 1, 0 }
  0x1b   : > { %s2479_s10 = scalar_select %p2018_p9, 1, 0 }
  0x1c   : > { %s2025_s11 = scalar_select %p60_p7, %s1901_s23, %s62_s30  }
  0x1d   : > { %p2027_p11 = por %p195_p10, %p75_p3  ;;  %p1571_p13 = scmp.lt.s32.totalorder %s1913_s26, 2 }
  0x1e   : > { %2480 = sst [smem:[#allocation24_spill]] %s2025_s11  ;;  %s2034_s13 = sand.u32 1, %s1901_s23  }
  0x1f   : > { %s2481_s12 = scalar_select %p2027_p11, 1, 0 }
  0x20   : > { %s2037_s14 = sshll.u32 %s2034_s13, 5  ;;  %s2040_s15 = sshll.u32 %s1909_s25, 9 }
  0x21   : > { %2482 = sst [smem:[#allocation25_spill]] %s2481_s12  ;;  %p2044_p0 = pnand %p1571_p13, %p2006_p4 }
  0x22   : > { %s299_s17 = sand.u32 1, %s1913_s26   ;;  %s2484_s1 = sld [smem:[#allocation27_spill]] }
  0x23   : > { %s303_s30 = scalar_lea.vmem [#allocation5], %s2037_s14  ;;  %s2060_s7 = scalar_lea.sflag [#allocation6], %s299_s17 }
  0x24   : > { %s312_s8 = sshll.u32 %s303_s30, 4  ;;  %p2066_p4 = pneg %p2044_p0  ;;  %s2057_s8 = int_to_ptr.vmem [resolvable:$true] %s312_s8 }
  0x28   : > { %s2053_s20 = scalar_lea.hbm %s2484_s1, %s2040_s15  ;;  %s1648_s30 = scalar_lea.hbm %s2484_s1, 1024 }
  0x29   : > { %s1643_s28 = scalar_lea.hbm %s2053_s20, 512  ;;  %p1649_p7 = scmp.lt.u32.totalorder %s2053_s20, %s2484_s1 }
  0x2a   : > { %p1644_p3 = scmp.ne.s32.totalorder %s2053_s20, %s1643_s28  ;;  %p1650_p10 = scmp.lt.u32.totalorder %s1648_s30, %s1643_s28 }
  0x2b   : > { %p1652_p12 = scmp.lt.u32.totalorder %s1643_s28, %s2053_s20 }
  0x2c   : > { %p1646_p5 = pnand %p2066_p4, %p1644_p3  ;;  %p1651_p13 = por %p1650_p10, %p1649_p7 }
  0x2e   : > { %p1647_p6 = pneg %p1646_p5  ;;  %p1653_p1 = por %p1652_p12, %p1651_p13 }
  0x30   : > { %p1654_p2 = pnand %p1653_p1, %p1647_p6 }
  0x32   : > { %1657 = shalt.err (!%p1654_p2)
}
  0x33   : > { %s1658_s17 = scalar_lea.vmem %s2057_s8, 512  ;;  %s1915_s18 = smov [#allocation5]  }
  0x34   : > { %p1659_p3 = scmp.ne.s32.totalorder %s2057_s8, %s1658_s17  ;;  %s1663_s19 = sshll.u32 %s1915_s18, 4  ;;  %s1664_s19 = int_to_ptr.vmem [resolvable:$false] %s1663_s19 }
  0x35   : > { %s1665_s25 = scalar_lea.vmem %s1664_s19, 1024  ;;  %p1666_p9 = scmp.lt.s32.totalorder %s2057_s8, %s1664_s19 }
  0x36   : > { %p1661_p5 = pnand %p1659_p3, %p2066_p4  ;;  %p1667_p8 = scmp.lt.s32.totalorder %s1665_s25, %s1658_s17 }
  0x38   : > { %p1662_p11 = pneg %p1661_p5  ;;  %p1668_p7 = por %p1667_p8, %p1666_p9 }
  0x3a   : > { %p1669_p10 = pnand %p1668_p7, %p1662_p11 }
  0x3c   : > { %1672 = shalt.err (!%p1669_p10)
}
  0x3d   : > { %s2461_s28 = smov 128   ;;  %s2463_s11 = smov 8  }
  0x3e   : > { %1554 = dma.hbm_to_vmem [thread:$0]  (!%p2044_p0), %s2053_s20, 512, %s2057_s8, %s2060_s7, %s2461_s28, %s2461_s28, %s2463_s11  }
  0x3f   : > { %p2486_p8 = scmp.lt.s32.totalorder %s1913_s26, 3  ;;  %p2487_p9 = scmp.ge.s32.totalorder %s1913_s26, 1 }
  0x40   : > { %s2489_s0 = sld [smem:[#allocation26_spill]]  ;;  %s279_s25 = scalar_lea.vmem [#allocation2], %s2037_s14 }
  0x41   : > { %p2097_p11 = pnand %p2487_p9, %p2486_p8  ;;  %s289_s1 = sshll.u32 %s279_s25, 4  ;;  %s2108_s1 = int_to_ptr.vmem [resolvable:$true] %s289_s1 }
  0x42   : > { %s2114_s28 = scalar_lea.hbm %s2451_s2, %s2040_s15  ;;  %s276_s11 = scalar_lea.sflag [#allocation3], %s2034_s13 }
  0x43   : > { %s2488_s30 = scalar_select %p2097_p11, 1, 0 }
  0x46   : > { %s2105_s19 = scalar_lea.hbm %s2489_s0, %s2040_s15  ;;  %s1678_s26 = scalar_lea.hbm %s2489_s0, 1024 }
  0x47   : > { %s1673_s23 = scalar_lea.hbm %s2105_s19, 512  ;;  %p1679_p6 = scmp.lt.u32.totalorder %s2105_s19, %s2489_s0 }
  0x48   : > { %p1674_p12 = scmp.ne.s32.totalorder %s2105_s19, %s1673_s23  ;;  %p1680_p13 = scmp.lt.u32.totalorder %s1678_s26, %s1673_s23 }
  0x49   : > { %p1682_p5 = scmp.lt.u32.totalorder %s1673_s23, %s2105_s19 }
  0x4a   : > { %p1676_p1 = pnand %p1674_p12, %p2066_p4  ;;  %p1681_p3 = por %p1680_p13, %p1679_p6 }
  0x4c   : > { %p1677_p2 = pneg %p1676_p1  ;;  %p1683_p7 = por %p1682_p5, %p1681_p3 }
  0x4e   : > { %p1684_p10 = pnand %p1683_p7, %p1677_p2 }
  0x50   : > { %1687 = shalt.err (!%p1684_p10)
}
  0x51   : > { %s1688_s25 = scalar_lea.vmem %s2108_s1, 512  ;;  %s1918_s20 = smov [#allocation2]  }
  0x52   : > { %p1689_p8 = scmp.ne.s32.totalorder %s2108_s1, %s1688_s25  ;;  %s1693_s8 = sshll.u32 %s1918_s20, 4  ;;  %s1694_s8 = int_to_ptr.vmem [resolvable:$false] %s1693_s8 }
  0x53   : > { %s1695_s21 = scalar_lea.vmem %s1694_s8, 1024  ;;  %p1696_p1 = scmp.lt.s32.totalorder %s2108_s1, %s1694_s8 }
  0x54   : > { %p1691_p9 = pnand %p1689_p8, %p2066_p4  ;;  %p1697_p11 = scmp.lt.s32.totalorder %s1695_s21, %s1688_s25 }
  0x56   : > { %p1692_p12 = pneg %p1691_p9  ;;  %p1698_p6 = por %p1697_p11, %p1696_p1 }
  0x58   : > { %p1699_p13 = pnand %p1698_p6, %p1692_p12 }
  0x5a   : > { %1702 = shalt.err (!%p1699_p13)
}
  0x5b   : > { %s2490_s23 = smov 8   ;;  %s2491_s26 = smov 128  }
  0x5c   : > { %1551 = dma.hbm_to_vmem [thread:$0]  (!%p2044_p0), %s2105_s19, 512, %s2108_s1, %s276_s11, %s2491_s26, %s2491_s26, %s2490_s23  }
  0x5d   : > { %s326_s12 = scalar_lea.vmem [#allocation7], %s2037_s14  ;;  %s1703_s18 = scalar_lea.hbm %s2114_s28, 512 }
  0x5e   : > { %s335_s17 = sshll.u32 %s326_s12, 4  ;;  %p1704_p11 = scmp.ne.s32.totalorder %s2114_s28, %s1703_s18  ;;  %s2144_s17 = int_to_ptr.vmem [resolvable:$true] %s335_s17 }
  0x5f   : > { %s1708_s8 = scalar_lea.hbm %s2451_s2, 1024  ;;  %p1709_p5 = scmp.lt.u32.totalorder %s2114_s28, %s2451_s2 }
  0x60   : > { %p1706_p2 = pnand %p1704_p11, %p2066_p4  ;;  %p1710_p7 = scmp.lt.u32.totalorder %s1708_s8, %s1703_s18 }
  0x61   : > { %p1712_p8 = scmp.lt.u32.totalorder %s1703_s18, %s2114_s28 }
  0x62   : > { %p1707_p3 = pneg %p1706_p2  ;;  %p1711_p10 = por %p1710_p7, %p1709_p5 }
  0x64   : > { %p1713_p9 = por %p1712_p8, %p1711_p10 }
  0x66   : > { %p1714_p12 = pnand %p1713_p9, %p1707_p3 }
  0x68   : > { %1717 = shalt.err (!%p1714_p12)
}
  0x69   : > { %s1718_s1 = scalar_lea.vmem %s2144_s17, 512  ;;  %s1919_s11 = smov [#allocation7]  }
  0x6a   : > { %p1719_p1 = scmp.ne.s32.totalorder %s2144_s17, %s1718_s1  ;;  %s1723_s19 = sshll.u32 %s1919_s11, 4  ;;  %s1724_s19 = int_to_ptr.vmem [resolvable:$false] %s1723_s19 }
  0x6b   : > { %s1725_s0 = scalar_lea.vmem %s1724_s19, 1024  ;;  %p1726_p11 = scmp.lt.s32.totalorder %s2144_s17, %s1724_s19 }
  0x6c   : > { %p1721_p6 = pnand %p1719_p1, %p2066_p4  ;;  %p1727_p2 = scmp.lt.s32.totalorder %s1725_s0, %s1718_s1 }
  0x6e   : > { %p1722_p13 = pneg %p1721_p6  ;;  %p1728_p5 = por %p1727_p2, %p1726_p11 }
  0x70   : > { %p1729_p7 = pnand %p1728_p5, %p1722_p13 }
  0x72   : > { %1732 = shalt.err (!%p1729_p7)
}
  0x73   : > { %1557 = dma.hbm_to_vmem [thread:$0]  (!%p2044_p0), %s2114_s28, 512, %s2144_s17, %s2060_s7, %s2491_s26, %s2491_s26, %s2490_s23  }
  0x74   : > { %s2175_s25 = scalar_lea.hbm %s2452_s3, %s2040_s15  ;;  %s349_s20 = scalar_lea.vmem [#allocation8], %s2037_s14 }
  0x75   : > { %s359_s8 = sshll.u32 %s349_s20, 4  ;;  %s346_s21 = scalar_lea.sflag [#allocation9], %s2034_s13  ;;  %s2178_s8 = int_to_ptr.vmem [resolvable:$true] %s359_s8 }
  0x76   : > { %s1733_s1 = scalar_lea.hbm %s2175_s25, 512  ;;  %s1738_s17 = scalar_lea.hbm %s2452_s3, 1024 }
  0x77   : > { %p1734_p3 = scmp.ne.s32.totalorder %s2175_s25, %s1733_s1  ;;  %p1739_p9 = scmp.lt.u32.totalorder %s2175_s25, %s2452_s3 }
  0x78   : > { %p1740_p12 = scmp.lt.u32.totalorder %s1738_s17, %s1733_s1  ;;  %p1742_p6 = scmp.lt.u32.totalorder %s1733_s1, %s2175_s25 }
  0x79   : > { %p1736_p10 = pnand %p1734_p3, %p2066_p4 }
  0x7a   : > { %p1741_p1 = por %p1740_p12, %p1739_p9 }
  0x7b   : > { %p1737_p8 = pneg %p1736_p10 }
  0x7c   : > { %p1743_p13 = por %p1742_p6, %p1741_p1 }
  0x7e   : > { %p1744_p11 = pnand %p1743_p13, %p1737_p8 }
  0x80   : > { %1747 = shalt.err (!%p1744_p11)
}
  0x81   : > { %s1748_s14 = scalar_lea.vmem %s2178_s8, 512  ;;  %s1920_s19 = smov [#allocation8]  }
  0x82   : > { %p1749_p2 = scmp.ne.s32.totalorder %s2178_s8, %s1748_s14  ;;  %s1753_s0 = sshll.u32 %s1920_s19, 4  ;;  %s1754_s0 = int_to_ptr.vmem [resolvable:$false] %s1753_s0 }
  0x83   : > { %s1755_s12 = scalar_lea.vmem %s1754_s0, 1024  ;;  %p1756_p3 = scmp.lt.s32.totalorder %s2178_s8, %s1754_s0 }
  0x84   : > { %p1751_p5 = pnand %p1749_p2, %p2066_p4  ;;  %p1757_p10 = scmp.lt.s32.totalorder %s1755_s12, %s1748_s14 }
  0x86   : > { %p1752_p7 = pneg %p1751_p5  ;;  %p1758_p9 = por %p1757_p10, %p1756_p3 }
  0x88   : > { %p1759_p12 = pnand %p1758_p9, %p1752_p7 }
  0x8a   : > { %1762 = shalt.err (!%p1759_p12)
}
  0x8b   : > { %1560 = dma.hbm_to_vmem [thread:$0]  (!%p2044_p0), %s2175_s25, 512, %s2178_s8, %s346_s21, %s2491_s26, %s2491_s26, %s2490_s23  }
  0x8c   : > { %p2492_p4 = scmp.ne.s32.totalorder %s2488_s30, 0 }
  0x8d   : > { %s2210_s29 = sand.u32 (!%p2492_p4), 1, %s1897_s22   ;;  %p2493_p8 = scmp.ne.s32.totalorder (!%p2492_p4), %s2478_s9, 0 }
  0x8e   : > { %371 = sbr.rel (%p2492_p4) target bundleno = 922 (0x39a), region = 36  ;;  %s2213_s18 = sshll.u32 (!%p2492_p4), %s2210_s29, 5 }
  0x8f   : > { %s374_s16 = scalar_lea.sflag (!%p2492_p4), [#allocation3], %s2210_s29  ;;  %s2217_s20 = scalar_lea.vmem (!%p2492_p4), [#allocation2], %s2213_s18 }
  0x95   : > { %1872 = dma.done.wait (%p2493_p8), %s374_s16, 512  }
  0x96   : > { %1874 = vsyncadd (%p2493_p8), %s374_s16, 4294966784  ;;  %s382_s13 = sand.u32 1, %s1994_s27   ;;  %s386_s23 = scalar_lea.vmem [#allocation5], %s2213_s18 }
  0x97   : > { %s383_s30 = scalar_lea.sflag [#allocation6], %s382_s13 }
  0x98   : > { %1876 = dma.done.wait (%p2493_p8), %s383_s30, 1024  }
  0x99   : > { %1878 = vsyncadd (%p2493_p8), %s383_s30, 4294966272  ;;  %s2232_s26 = scalar_lea.vmem [#allocation7], %s2213_s18  ;;  %s401_s25 = scalar_lea.sflag [#allocation9], %s2210_s29 }
  0x9a   : > { %s2236_s8 = scalar_lea.vmem [#allocation8], %s2213_s18 }
  0x9b   : > { %1880 = dma.done.wait (%p2493_p8), %s401_s25, 512  }
  0x9c   : > { %1882 = vsyncadd (%p2493_p8), %s401_s25, 4294966784  ;;  %v1921_v0 = vmov 0.0   ;;  %vm1922_vm0 = vmmov 0   ;;  %v473_v1 = vld [vmem:[%s386_s23] sm:$0xff]  ;;  %vm481_vm1 = vcmask 64512   ;;  %v475_v3 = vld [vmem:[%s386_s23 + $0x10] sm:$0xff] }
  0x9d   : > { %1494 = vmatprep.subr.mxu0 %v1921_v0  ;;  %1496 = vmatprep.mubr.msk.f32.mxu0 %vm1922_vm0, %v1921_v0  ;;  %v465_v2 = vld [vmem:[%s2217_s20] sm:$0xff]  ;;  %v474_v5 = vld [vmem:[%s386_s23 + $0x8] sm:$0xff]  ;;  %v467_v7 = vld [vmem:[%s2217_s20 + $0x10] sm:$0xff]  ;;  %s2272_s9 = scalar_lea.vmem [#allocation13], %s2213_s18  ;;  %s450_s21 = scalar_lea.vmem [#allocation11], %s2213_s18 }
  0x9e   : > { %1499 = vmatprep.subr.mxu1 %v1921_v0  ;;  %1501 = vmatprep.mubr.msk.f32.mxu1 %vm1922_vm0, %v1921_v0  ;;  %v469_v4 = vmul.f32 0.35355338, %v465_v2  ;;  %v466_v6 = vld [vmem:[%s2217_s20 + $0x8] sm:$0xff]  ;;  %v476_v9 = vld [vmem:[%s386_s23 + $0x18] sm:$0xff]  ;;  %v471_v11 = vmul.f32 0.35355338, %v467_v7 }
  0x9f   : > { %1495 = vmatpush3.msra.mxu0 %v473_v1  ;;  %1500 = vmatpush3.msra.mxu1 %v474_v5  ;;  %v470_v8 = vmul.f32 0.35355338, %v466_v6  ;;  %v468_v10 = vld [vmem:[%s2217_s20 + $0x18] sm:$0xff]  ;;  %v477_v13 = vld [vmem:[%s2236_s8] sm:$0xff]  ;;  %v478_v14 = vld [vmem:[%s2236_s8 + $0x8] sm:$0xff]  ;;  %s1191_s1 = sshll.u32 %s2272_s9, 4  ;;  %s2311_s1 = int_to_ptr.vmem [resolvable:$true] %s1191_s1 }
  0xa0   : > { %1504 = vmatprep.subr.mxu0 %v1921_v0  ;;  %1497 = vmatmul.mubr.msk.f32.vlgmr.msra.gmra.mrb[0].mxu0 %vm481_vm1, %v469_v4  ;;  %v472_v12 = vmul.f32 0.35355338, %v468_v10  ;;  %v479_v21 = vld [vmem:[%s2236_s8 + $0x10] sm:$0xff]  ;;  %v480_v23 = vld [vmem:[%s2236_s8 + $0x18] sm:$0xff]  ;;  %v826_v53 = vld [vmem:[%s2232_s26] sm:$0xff]  ;;  %s2314_s7 = sshll.u32 %s1905_s24, 9 }
  0xa1   : > { %1509 = vmatprep.subr.mxu1 %v1921_v0  ;;  %1505 = vmatpush3.msra.mxu0 %v475_v3  ;;  %v827_v54 = vld [vmem:[%s2232_s26 + $0x8] sm:$0xff]  ;;  %v828_v61 = vld [vmem:[%s2232_s26 + $0x10] sm:$0xff]  ;;  %v829_v2 = vld [vmem:[%s2232_s26 + $0x18] sm:$0xff]  ;;  %s1172_s28 = sshll.u32 %s450_s21, 4  ;;  %s2320_s11 = scalar_lea.hbm %s2454_s5, %s2314_s7  ;;  %s2322_s28 = int_to_ptr.vmem [resolvable:$true] %s1172_s28 }
  0xa2   : > { %1502 = vmatmul.mubr.msk.f32.vlgmr.msra.gmra.mrb[0].mxu1 %vm481_vm1, %v470_v8  ;;  %1506 = vmatprep.mubr.msk.f32.mxu0 %vm1922_vm0, %v1921_v0  ;;  %s2328_s0 = scalar_lea.hbm %s2455_s6, %s2314_s7  ;;  %s2332_s24 = scalar_lea.sflag [#allocation12], %s382_s13 }
  0xa3   : > { %1510 = vmatpush3.msra.mxu1 %v476_v9  ;;  %1511 = vmatprep.mubr.msk.f32.mxu1 %vm1922_vm0, %v1921_v0  ;;  %s1763_s12 = scalar_lea.vmem %s2322_s28, 512  ;;  %p2494_p1 = scmp.ne.s32.totalorder %s2479_s10, 0 }
  0xa4   : > { %1514 = vmatprep.subr.mxu0 %v1921_v0  ;;  %1507 = vmatmul.mubr.msk.f32.vlgmr.msra.gmra.mrb[2].mxu0 %vm481_vm1, %v471_v11  ;;  %p1764_p0 = scmp.ne.s32.totalorder %s2322_s28, %s1763_s12  ;;  %s1923_s16 = smov [#allocation11]  }
  0xa5   : > { %1519 = vmatprep.subr.mxu1 %v1921_v0  ;;  %1516 = vmatprep.mubr.msk.f32.mxu0 %vm1922_vm0, %v1921_v0  ;;  %s1767_s20 = sshll.u32 %s1923_s16, 4  ;;  %s1768_s20 = int_to_ptr.vmem [resolvable:$false] %s1767_s20 }
  0xa6   : > { %1512 = vmatmul.mubr.msk.f32.vlgmr.msra.gmra.mrb[2].mxu1 %vm481_vm1, %v472_v12  ;;  %1515 = vmatpush3.msra.mxu0 %v826_v53  ;;  %p1765_p6 = pnand %p1764_p0, %p2494_p1  ;;  %s1769_s30 = scalar_lea.vmem %s1768_s20, 1024 }
  0xa7   : > { %1521 = vmatprep.mubr.msk.f32.mxu1 %vm1922_vm0, %v1921_v0  ;;  %1524 = vmatprep.subr.mxu0 %v1921_v0  ;;  %p1770_p11 = scmp.lt.s32.totalorder %s2322_s28, %s1768_s20  ;;  %p1771_p2 = scmp.lt.s32.totalorder %s1769_s30, %s1763_s12 }
  0xa8   : > { %1520 = vmatpush3.msra.mxu1 %v827_v54  ;;  %p1766_p13 = pneg %p1765_p6 }
  0xa9   : > { %1529 = vmatprep.subr.mxu1 %v1921_v0  ;;  %p1772_p5 = por %p1771_p2, %p1770_p11 }
  0xab   : > { %p1773_p7 = pnand %p1772_p5, %p1766_p13 }
 0x173   : > { %v551_v15 = vpop.f32.mrb[0].mxu0 }
 0x174   : > { %v552_v16 = vadd.f32 %v551_v15, %v477_v13  ;;  %v1498_v17 = vpop.f32.mrb[1].mxu0 }
 0x175   : > { %v624_v18 = vpop.f32.mrb[0].mxu1 }
 0x176   : > { %v625_v19 = vadd.f32 %v624_v18, %v478_v14  ;;  %v1503_v20 = vpop.f32.mrb[1].mxu1  ;;  %774 = vst.msk [vmem:[%s2272_s9] sm:$0xff] %vm481_vm1, %v552_v16  ;;  %v778_v22 = vsel %vm481_vm1, %v552_v16, -inf }
 0x177   : > { %779 = vmax.xlane.f32.xlu0 %v778_v22  ;;  %v697_v24 = vpop.f32.mrb[2].mxu0 }
 0x178   : > { %775 = vst.msk [vmem:[%s2272_s9 + $0x8] sm:$0xff] %vm481_vm1, %v625_v19  ;;  %v698_v25 = vadd.f32 %v697_v24, %v479_v21  ;;  %v1508_v26 = vpop.f32.mrb[3].mxu0  ;;  %v781_v28 = vsel %vm481_vm1, %v625_v19, -inf }
 0x179   : > { %v770_v27 = vpop.f32.mrb[2].mxu1 }
 0x17a   : > { %v771_v29 = vadd.f32 %v770_v27, %v480_v23  ;;  %v1513_v30 = vpop.f32.mrb[3].mxu1  ;;  %776 = vst.msk [vmem:[%s2272_s9 + $0x10] sm:$0xff] %vm481_vm1, %v698_v25  ;;  %v784_v31 = vsel %vm481_vm1, %v698_v25, -inf }
 0x17b   : > { %782 = vmax.xlane.f32.xlu0 %v781_v28  ;;  %785 = vmax.xlane.f32.xlu1 %v784_v31 }
 0x17c   : > { %777 = vst.msk [vmem:[%s2272_s9 + $0x18] sm:$0xff] %vm481_vm1, %v771_v29  ;;  %v787_v32 = vsel %vm481_vm1, %v771_v29, -inf }
 0x17f   : > { %788 = vmax.xlane.f32.xlu1 %v787_v32 }
 0x204   : > { %v780_v33 = vpop.xlane.xlu0 %779 }
 0x205   : > { %v790_v34 = vsub.f32 %v552_v16, %v780_v33 }
 0x207   : > { %v794_v35 = vmul.f32 1.442695, %v790_v34 }
 0x208   : > { %v783_v36 = vpop.xlane.xlu0 %782  ;;  %v786_v37 = vpop.xlane.xlu1 %785 }
 0x209   : > { %1627 = vpow2.f32 %v794_v35  ;;  %v791_v38 = vsub.f32 %v625_v19, %v783_v36  ;;  %v792_v39 = vsub.f32 %v698_v25, %v786_v37 }
 0x20b   : > { %v796_v40 = vmul.f32 1.442695, %v791_v38  ;;  %v798_v41 = vmul.f32 1.442695, %v792_v39 }
 0x20c   : > { %v789_v42 = vpop.xlane.xlu1 %788 }
 0x20d   : > { %1629 = vpow2.f32 %v796_v40  ;;  %v793_v43 = vsub.f32 %v771_v29, %v789_v42 }
 0x20e   : > { %1631 = vpow2.f32 %v798_v41 }
 0x20f   : > { %v800_v44 = vmul.f32 1.442695, %v793_v43 }
 0x211   : > { %1633 = vpow2.f32 %v800_v44 }
 0x213   : > { %v1628_v45 = vpop.eup %1627 }
 0x214   : > { %v802_v46 = vsel %vm481_vm1, %v1628_v45, 0.0 }
 0x215   : > { %803 = vadd.xlane.f32.xlu0 %v802_v46 }
 0x217   : > { %v1630_v47 = vpop.eup %1629 }
 0x218   : > { %v1632_v48 = vpop.eup %1631  ;;  %v805_v49 = vsel %vm481_vm1, %v1630_v47, 0.0 }
 0x219   : > { %806 = vadd.xlane.f32.xlu1 %v805_v49  ;;  %v808_v50 = vsel %vm481_vm1, %v1632_v48, 0.0 }
 0x21a   : > { %809 = vadd.xlane.f32.xlu0 %v808_v50 }
 0x21b   : > { %v1634_v51 = vpop.eup %1633 }
 0x21c   : > { %v811_v52 = vsel %vm481_vm1, %v1634_v51, 0.0 }
 0x21d   : > { %812 = vadd.xlane.f32.xlu1 %v811_v52 }
 0x2a2   : > { %v804_v55 = vpop.xlane.xlu0 %803 }
 0x2a3   : > { %1635 = vrcp.f32 %v804_v55 }
 0x2a6   : > { %v807_v56 = vpop.xlane.xlu1 %806 }
 0x2a7   : > { %v810_v57 = vpop.xlane.xlu0 %809  ;;  %1637 = vrcp.f32 %v807_v56 }
 0x2a8   : > { %1639 = vrcp.f32 %v810_v57 }
 0x2aa   : > { %v813_v58 = vpop.xlane.xlu1 %812 }
 0x2ab   : > { %1641 = vrcp.f32 %v813_v58 }
 0x2ad   : > { %v1636_v59 = vpop.eup %1635 }
 0x2ae   : > { %v815_v60 = vmul.f32 %v1636_v59, %v1628_v45 }
 0x2b0   : > { %822 = vst.msk [vmem:[%s450_s21] sm:$0xff] %vm481_vm1, %v815_v60  ;;  %1517 = vmatmul.mubr.msk.f32.vlgmr.msra.gmra.mrb[4].mxu0 %vm481_vm1, %v815_v60 }
 0x2b1   : > { %v1638_v62 = vpop.eup %1637  ;;  %1525 = vmatpush3.msra.mxu0 %v828_v61  ;;  %1526 = vmatprep.mubr.msk.f32.mxu0 %vm1922_vm0, %v1921_v0 }
 0x2b2   : > { %v1640_v63 = vpop.eup %1639  ;;  %v817_v1 = vmul.f32 %v1638_v62, %v1630_v47 }
 0x2b3   : > { %v819_v3 = vmul.f32 %v1640_v63, %v1632_v48 }
 0x2b4   : > { %823 = vst.msk [vmem:[%s450_s21 + $0x8] sm:$0xff] %vm481_vm1, %v817_v1  ;;  %1522 = vmatmul.mubr.msk.f32.vlgmr.msra.gmra.mrb[4].mxu1 %vm481_vm1, %v817_v1 }
 0x2b5   : > { %v1642_v4 = vpop.eup %1641  ;;  %824 = vst.msk [vmem:[%s450_s21 + $0x10] sm:$0xff] %vm481_vm1, %v819_v3  ;;  %1527 = vmatmul.mubr.msk.f32.vlgmr.msra.gmra.mrb[6].mxu0 %vm481_vm1, %v819_v3  ;;  %1530 = vmatpush3.msra.mxu1 %v829_v2 }
 0x2b6   : > { %v821_v5 = vmul.f32 %v1642_v4, %v1634_v51  ;;  %1531 = vmatprep.mubr.msk.f32.mxu1 %vm1922_vm0, %v1921_v0 }
 0x2b8   : > { %825 = vst.msk [vmem:[%s450_s21 + $0x18] sm:$0xff] %vm481_vm1, %v821_v5  ;;  %1532 = vmatmul.mubr.msk.f32.vlgmr.msra.gmra.mrb[6].mxu1 %vm481_vm1, %v821_v5 }
 0x2b9   : > { %1776 = shalt.err (!%p1773_p7)
}
 0x2ba   : > { %s1777_s27 = scalar_lea.hbm %s2320_s11, 512  ;;  %s1781_s26 = scalar_lea.hbm %s2454_s5, 1024 }
 0x2bb   : > { %p1778_p3 = scmp.ne.s32.totalorder %s2320_s11, %s1777_s27  ;;  %p1782_p12 = scmp.lt.u32.totalorder %s2320_s11, %s2454_s5 }
 0x2bc   : > { %p1783_p4 = scmp.lt.u32.totalorder %s1781_s26, %s1777_s27  ;;  %p1785_p0 = scmp.lt.u32.totalorder %s1777_s27, %s2320_s11 }
 0x2bd   : > { %p1779_p10 = pnand %p1778_p3, %p2494_p1 }
 0x2be   : > { %p1784_p8 = por %p1783_p4, %p1782_p12 }
 0x2bf   : > { %p1780_p9 = pneg %p1779_p10 }
 0x2c0   : > { %p1786_p6 = por %p1785_p0, %p1784_p8 }
 0x2c2   : > { %p1787_p13 = pnand %p1786_p6, %p1780_p9 }
 0x2c4   : > { %1790 = shalt.err (!%p1787_p13)
}
 0x2c5   : > { %s1924_s9 = smov 128   ;;  %s1925_s21 = smov 8  }
 0x2c6   : > { %1543 = dma.vmem_to_hbm [thread:$0]  (%p2494_p1), %s2322_s28, 512, %s2320_s11, %s2332_s24, %s1924_s9, %s1924_s9, %s1925_s21  }
 0x2c7   : > { %s1791_s17 = scalar_lea.vmem %s2311_s1, 512  ;;  %s1926_s15 = smov [#allocation13]  }
 0x2c8   : > { %p1792_p11 = scmp.ne.s32.totalorder %s2311_s1, %s1791_s17  ;;  %s1795_s14 = sshll.u32 %s1926_s15, 4  ;;  %s1796_s14 = int_to_ptr.vmem [resolvable:$false] %s1795_s14 }
 0x2c9   : > { %s1797_s19 = scalar_lea.vmem %s1796_s14, 1024  ;;  %p1798_p7 = scmp.lt.s32.totalorder %s2311_s1, %s1796_s14 }
 0x2ca   : > { %p1793_p2 = pnand %p1792_p11, %p2494_p1  ;;  %p1799_p3 = scmp.lt.s32.totalorder %s1797_s19, %s1791_s17 }
 0x2cc   : > { %p1794_p5 = pneg %p1793_p2  ;;  %p1800_p10 = por %p1799_p3, %p1798_p7 }
 0x2ce   : > { %p1801_p9 = pnand %p1800_p10, %p1794_p5 }
 0x2d0   : > { %1804 = shalt.err (!%p1801_p9)
}
 0x2d1   : > { %s1805_s28 = scalar_lea.hbm %s2328_s0, 512  ;;  %s1809_s16 = scalar_lea.hbm %s2455_s6, 1024 }
 0x2d2   : > { %p1806_p12 = scmp.ne.s32.totalorder %s2328_s0, %s1805_s28  ;;  %p1810_p0 = scmp.lt.u32.totalorder %s2328_s0, %s2455_s6 }
 0x2d3   : > { %p1811_p6 = scmp.lt.u32.totalorder %s1809_s16, %s1805_s28  ;;  %p1813_p11 = scmp.lt.u32.totalorder %s1805_s28, %s2328_s0 }
 0x2d4   : > { %p1807_p4 = pnand %p1806_p12, %p2494_p1 }
 0x2d5   : > { %p1812_p13 = por %p1811_p6, %p1810_p0 }
 0x2d6   : > { %p1808_p8 = pneg %p1807_p4 }
 0x2d7   : > { %p1814_p2 = por %p1813_p11, %p1812_p13 }
 0x2d9   : > { %p1815_p5 = pnand %p1814_p2, %p1808_p8 }
 0x2db   : > { %1818 = shalt.err (!%p1815_p5)
}
 0x2dc   : > { %1544 = dma.vmem_to_hbm [thread:$0]  (%p2494_p1), %s2311_s1, 512, %s2328_s0, %s2332_s24, %s1924_s9, %s1924_s9, %s1925_s21  }
 0x2dd   : > { %s443_s27 = scalar_lea.vmem [#allocation10], %s2213_s18  ;;  %s2394_s0 = scalar_lea.hbm %s2453_s4, %s2314_s7 }
 0x2de   : > { %s1153_s13 = sshll.u32 %s443_s27, 4  ;;  %s1127_s24 = scalar_lea.sflag [#allocation4], %s2210_s29  ;;  %s2387_s13 = int_to_ptr.vmem [resolvable:$true] %s1153_s13 }
 0x2df   : > { %s1819_s23 = scalar_lea.vmem %s2387_s13, 512  ;;  %s1927_s26 = smov [#allocation10]  }
 0x2e0   : > { %p1820_p7 = scmp.ne.s32.totalorder %s2387_s13, %s1819_s23  ;;  %s1823_s25 = sshll.u32 %s1927_s26, 4  ;;  %s1824_s25 = int_to_ptr.vmem [resolvable:$false] %s1823_s25 }
 0x2e1   : > { %s1825_s8 = scalar_lea.vmem %s1824_s25, 1024  ;;  %p1826_p9 = scmp.lt.s32.totalorder %s2387_s13, %s1824_s25 }
 0x2e2   : > { %p1821_p3 = pnand %p1820_p7, %p2494_p1  ;;  %p1827_p12 = scmp.lt.s32.totalorder %s1825_s8, %s1819_s23 }
 0x2e4   : > { %p1822_p10 = pneg %p1821_p3  ;;  %p1828_p4 = por %p1827_p12, %p1826_p9 }
 0x2e6   : > { %p1829_p8 = pnand %p1828_p4, %p1822_p10 }
 0x383   : > { %v899_v0 = vpop.f32.mrb[4].mxu0 }
 0x384   : > { %1122 = vst.msk [vmem:[%s443_s27] sm:$0xff] %vm481_vm1, %v899_v0  ;;  %v1518_v6 = vpop.f32.mrb[5].mxu0 }
 0x387   : > { %v972_v7 = vpop.f32.mrb[4].mxu1 }
 0x388   : > { %1123 = vst.msk [vmem:[%s443_s27 + $0x8] sm:$0xff] %vm481_vm1, %v972_v7  ;;  %v1045_v8 = vpop.f32.mrb[6].mxu0  ;;  %v1523_v9 = vpop.f32.mrb[5].mxu1 }
 0x389   : > { %1124 = vst.msk [vmem:[%s443_s27 + $0x10] sm:$0xff] %vm481_vm1, %v1045_v8  ;;  %v1528_v10 = vpop.f32.mrb[7].mxu0 }
 0x38b   : > { %v1118_v11 = vpop.f32.mrb[6].mxu1 }
 0x38c   : > { %1125 = vst.msk [vmem:[%s443_s27 + $0x18] sm:$0xff] %vm481_vm1, %v1118_v11  ;;  %v1533_v12 = vpop.f32.mrb[7].mxu1 }
 0x38d   : > { %1832 = shalt.err (!%p1829_p8)
}
 0x38e   : > { %s1833_s7 = scalar_lea.hbm %s2394_s0, 512  ;;  %s1837_s14 = scalar_lea.hbm %s2453_s4, 1024 }
 0x38f   : > { %p1834_p0 = scmp.ne.s32.totalorder %s2394_s0, %s1833_s7  ;;  %p1838_p11 = scmp.lt.u32.totalorder %s2394_s0, %s2453_s4 }
 0x390   : > { %p1839_p2 = scmp.lt.u32.totalorder %s1837_s14, %s1833_s7  ;;  %p1841_p7 = scmp.lt.u32.totalorder %s1833_s7, %s2394_s0 }
 0x391   : > { %p1835_p6 = pnand %p1834_p0, %p2494_p1 }
 0x392   : > { %p1840_p5 = por %p1839_p2, %p1838_p11 }
 0x393   : > { %p1836_p13 = pneg %p1835_p6 }
 0x394   : > { %p1842_p3 = por %p1841_p7, %p1840_p5 }
 0x396   : > { %p1843_p10 = pnand %p1842_p3, %p1836_p13 }
 0x398   : > { %1846 = shalt.err (!%p1843_p10)
}
 0x399   : > { %1542 = dma.vmem_to_hbm [thread:$0]  (%p2494_p1), %s2387_s13, 512, %s2394_s0, %s1127_s24, %s1924_s9, %s1924_s9, %s1925_s21  }
 0x39a PF: > { %s2495_s11 = sld [smem:[#allocation19_spill]]  ;;  %s2496_s12 = sld [smem:[#allocation25_spill]] }
 0x39b   : > { %s2497_s16 = sld [smem:[#allocation22_spill]] }
 0x3a0   : > { %s1206_s20 = sand.u32 1, %s2495_s11   ;;  %p2498_p9 = scmp.ne.s32.totalorder %s2496_s12, 0 }
 0x3a1   : > { %p2499_p12 = scmp.ge.s32.totalorder %s2497_s16, 2  ;;  %s1207_s30 = scalar_lea.sflag [#allocation4], %s1206_s20 }
 0x3a3   : > { %p1562_p4 = pnand %p2499_p12, %p2498_p9 }
 0x3a5   : > { %1884 = dma.done.wait (!%p1562_p4), %s1207_s30, 512  }
 0x3a6   : > { %1886 = vsyncadd (!%p1562_p4), %s1207_s30, 4294966784  ;;  %s2500_s10 = sadd.s32 4294967294, %s2497_s16  }
 0x3a7   : > { %s1215_s27 = sand.u32 1, %s2500_s10  }
 0x3a8   : > { %s1216_s1 = scalar_lea.sflag [#allocation12], %s1215_s27 }
 0x3a9   : > { %1888 = dma.done.wait (!%p1562_p4), %s1216_s1, 1024  }
 0x3aa   : > { %1890 = vsyncadd (!%p1562_p4), %s1216_s1, 4294966272  ;;  %s32_s26 = sadd.s32 1, %s2497_s16   ;;  %s2501_s29 = sld [smem:[#allocation20_spill]] }
 0x3ab   : > { %p29_p1 = scmp.ge.s32.totalorder %s32_s26, 4   ;;  %s2502_s23 = sld [smem:[#allocation24_spill]] }
 0x3ac   : > { %s2503_s24 = sld [smem:[#allocation21_spill]]  ;;  %s2504_s25 = sld [smem:[#allocation23_spill]] }
 0x3ad   : > { %s2505_s21 = smov %s1897_s22  ;;  %31 = sbr.rel (!%p29_p1) target bundleno = 15 (0xf), region = 150 }
 0x3b0   : > { %s2506_s22 = smov %s2501_s29 }
 0x3b4   :  { %1230 = vsyncpa [#allocation3], 1 }
 0x3b5   :  { %1232 = vsyncpa [#allocation3 + $0x1], 1 }
 0x3b6   :  { %1233 = vsyncpa [#allocation6], 1 }
 0x3b7   :  { %1235 = vsyncpa [#allocation6 + $0x1], 1 }
 0x3b8   :  { %1236 = vsyncpa [#allocation9], 1 }
 0x3b9   :  { %1238 = vsyncpa [#allocation9 + $0x1], 1 }
 0x3ba   :  { %1239 = vsyncpa [#allocation4], 1 }
 0x3bb   :  { %1241 = vsyncpa [#allocation4 + $0x1], 1 }
 0x3bc   :  { %1242 = vsyncpa [#allocation12], 1 }
 0x3bd   :  { %1244 = vsyncpa [#allocation12 + $0x1], 1 }

</bundles_post_ra>
